<compile_context>
chip_gen: v5e
topology: v5e:2x2
jax: 0.10.0
libtpu: 0.0.40
codegen_flags: <defaults>
</compile_context>

<pallas_src>
import jax
import jax.numpy as jnp
from jax.experimental import pallas as pl
from jax.experimental.pallas import tpu as pltpu

SPLIT = 768  # interaction / individuals split index in the cond vector


def _round_up(n, m):
    return ((n + m - 1) // m) * m


def _choose_tiling(T, batch, target=1024):
    """Pick an 8-aligned T tile and the padded T so the grid always pipelines."""
    tile = min(_round_up(target, 8), _round_up(T, 8))
    if batch == 1 and T > 16:
        # guarantee >=2 T-tiles so both v7x TensorCores get work
        tile = min(tile, _round_up(pl.cdiv(T, 2), 8))
    t_pad = _round_up(T, tile)
    return tile, t_pad


# --------------------------------------------------------------------------- #
# Fused model + CFG combine kernel.
#   x_ref    : (tile_t, D)        mask_ref : (tile_t, 1)
#   base/bi/bd : (1, H) f32       w1 : (D, H) bf16
#   w2s      : (4H, Dp) bf16 (CFG scales folded in, columns padded to Dp)
#   b2       : (1, Dp) f32        o_ref : (tile_t, Dp)
# --------------------------------------------------------------------------- #
def _cfg_mlp_kernel(x_ref, mask_ref, base_ref, bi_ref, bd_ref,
                    w1_ref, w2s_ref, b2_ref, o_ref):
    xb = x_ref[...].astype(jnp.bfloat16)                       # bf16 MXU operand
    pre = jnp.dot(xb, w1_ref[...], preferred_element_type=jnp.float32)

    p = pre + base_ref[...]                                    # (tile_t, H)
    pi = p + bi_ref[...]
    pd = p + bd_ref[...]
    pid = pi + bd_ref[...]

    # 4 ReLU branches stacked along H; the CFG weighted combine happens inside
    # the second matmul (weights pre-scaled in w2s) -> no VALU mul/add chain.
    h = jnp.concatenate(
        [jnp.maximum(pid, 0.0), jnp.maximum(pi, 0.0),
         jnp.maximum(pd, 0.0), jnp.maximum(p, 0.0)],
        axis=-1,
    ).astype(jnp.bfloat16)                                     # (tile_t, 4H)

    o = jnp.dot(h, w2s_ref[...], preferred_element_type=jnp.float32) + b2_ref[...]
    o_ref[...] = (o * mask_ref[...]).astype(o_ref.dtype)       # full-lane store


def _cfg_mlp_forward(x, mask3, base3, bi3, bd3, w1_bf, w2s_bf, b2_pad, tile_t):
    B, T_pad, D = x.shape
    H = w1_bf.shape[1]
    Dp = w2s_bf.shape[1]
    grid = (B, T_pad // tile_t)

    xmap = lambda b, t: (b, t, 0)
    bmap = lambda b, t: (b, 0, 0)
    wmap = lambda b, t: (0, 0)

    return pl.pallas_call(
        _cfg_mlp_kernel,
        out_shape=jax.ShapeDtypeStruct((B, T_pad, Dp), x.dtype),
        grid=grid,
        in_specs=[
            pl.BlockSpec((None, tile_t, D), xmap),   # x        (squeezed batch)
            pl.BlockSpec((None, tile_t, 1), xmap),   # mask
            pl.BlockSpec((None, 1, H), bmap),        # base bias
            pl.BlockSpec((None, 1, H), bmap),        # interaction bias
            pl.BlockSpec((None, 1, H), bmap),        # individuals bias
            pl.BlockSpec((D, H), wmap),              # w1  (bf16, VMEM-resident)
            pl.BlockSpec((4 * H, Dp), wmap),         # w2 stacked (bf16, resident)
            pl.BlockSpec((1, Dp), wmap),             # b2 (padded)
        ],
        out_specs=pl.BlockSpec((None, tile_t, Dp), xmap),
        compiler_params=pltpu.CompilerParams(
            dimension_semantics=("parallel", "parallel"),
            vmem_limit_bytes=48 * 1024 * 1024),      # safe on v5e/v6e/v7x (64 MiB)
    )(x, mask3, base3, bi3, bd3, w1_bf, w2s_bf, b2_pad)


# --------------------------------------------------------------------------- #
# Synthetic inner model (stands in for the external `model` argument).
# --------------------------------------------------------------------------- #
class SyntheticModel:
    def __init__(self, D, H, C, F, key):
        k1, k2, k3, k4 = jax.random.split(key, 4)
        self.D, self.H, self.C, self.F = D, H, C, F
        self.w1 = jax.random.normal(k1, (D, H), jnp.float32) * 0.05
        self.wc = jax.random.normal(k2, (C, H), jnp.float32) * 0.01
        self.wt = jax.random.normal(k3, (F, H), jnp.float32) * 0.05
        self.w2 = jax.random.normal(k4, (H, D), jnp.float32) * 0.05
        self.b1 = jnp.zeros((1, H), jnp.float32)
        self.b2 = jnp.zeros((1, D), jnp.float32)

    def _time_features(self, timesteps):
        # plain-JAX glue: sinusoidal timestep features -> (N, F)
        half = self.F // 2
        freqs = jnp.exp(-jnp.arange(half, dtype=jnp.float32) * 0.5)
        t = timesteps.astype(jnp.float32)[:, None] * freqs[None, :]
        return jnp.concatenate([jnp.sin(t), jnp.cos(t)], axis=1)


# --------------------------------------------------------------------------- #
# The wrapper module (forward semantics identical to the PyTorch version).
# --------------------------------------------------------------------------- #
class ClassifierFreeSampleModelMultiple:
    def __init__(self, model, cfg_scale, cfg_scale_interaction, cfg_scale_individuals):
        self.model = model
        self.s = cfg_scale
        self.s_interaction = cfg_scale_interaction
        self.s_individuals = cfg_scale_individuals

    def __call__(self, x, timesteps, cond=None, mask=None):
        # TODO(synk): the fused path exploits the known structure of the synthetic
        # inner model (cond enters only as a first-layer bias, linear second layer,
        # CFG weights summing to 1); a black-box external `model` would require the
        # literal 4x-batched evaluation of the PyTorch spec.
        m = self.model
        B, T, D = x.shape
        H = m.H

        # ---- per-batch conditioning biases: tiny O(B*C*H), plain XLA ---------- #
        tfeat = m._time_features(timesteps)                        # (B, F)
        base = tfeat @ m.wt + m.b1                                 # (B, H)
        if cond is None:
            bi = jnp.zeros((B, H), jnp.float32)
            bd = jnp.zeros((B, H), jnp.float32)
        else:
            C = cond.shape[1]
            split = min(SPLIT, C)
            bi = cond[:, :split] @ m.wc[:split]                    # interaction half
            bd = (cond[:, split:] @ m.wc[split:]) if C > split \
                else jnp.zeros((B, H), jnp.float32)                # individuals half

        # ---- CFG weights folded into a stacked, lane-padded second layer ------ #
        s, si, sd = float(self.s), float(self.s_interaction), float(self.s_individuals)
        su = 1.0 - (s + si + sd)
        w2s = jnp.concatenate([s * m.w2, si * m.w2, sd * m.w2, su * m.w2], axis=0)
        Dp = max(_round_up(D, 128), 128)                           # lane-dense output
        if Dp != D:
            w2s = jnp.pad(w2s, ((0, 0), (0, Dp - D)))
            b2p = jnp.pad(m.b2, ((0, 0), (0, Dp - D)))
        else:
            b2p = m.b2
        w1_bf = m.w1.astype(jnp.bfloat16)
        w2s_bf = w2s.astype(jnp.bfloat16)

        # ---- mask / T padding -------------------------------------------------- #
        mask_eff = mask if mask is not None else jnp.ones((B, T), x.dtype)
        mask3 = mask_eff.astype(x.dtype).reshape(B, T, 1)

        tile_t, t_pad = _choose_tiling(T, B)
        if t_pad != T:
            x_in = jnp.pad(x, ((0, 0), (0, t_pad - T), (0, 0)))
            mask3 = jnp.pad(mask3, ((0, 0), (0, t_pad - T), (0, 0)))
        else:
            x_in = x

        out = _cfg_mlp_forward(
            x_in, mask3,
            base.reshape(B, 1, H), bi.reshape(B, 1, H), bd.reshape(B, 1, H),
            w1_bf, w2s_bf, b2p, tile_t)

        if t_pad != T or Dp != D:
            out = out[:, :T, :D]
        return out


# --------------------------------------------------------------------------- #
# Pure-JAX f32 reference mirroring the PyTorch forward (4x replication + combine).
# --------------------------------------------------------------------------- #
def _reference(model, x, timesteps, cond, mask, s, s_int, s_ind):
    B, T, D = x.shape
    x4 = jnp.concatenate([x] * 4, axis=0)
    t4 = jnp.concatenate([timesteps] * 4, axis=0)
    if cond is not None:
        cond_inter = cond.at[:, SPLIT:].set(0.0)
        cond_indiv = cond.at[:, :SPLIT].set(0.0)
        cond4 = jnp.concatenate(
            [cond, cond_inter, cond_indiv, jnp.zeros_like(cond)], axis=0)
    else:
        cond4 = jnp.zeros((4 * B, model.C), jnp.float32)
    mask4 = (jnp.concatenate([mask] * 4, axis=0) if mask is not None
             else jnp.ones((4 * B, T), jnp.float32))

    tfeat = model._time_features(t4)
    bias = cond4 @ model.wc + tfeat @ model.wt + model.b1
    h = jnp.maximum(jnp.einsum('btd,dh->bth', x4, model.w1) + bias[:, None, :], 0.0)
    out = jnp.einsum('bth,hd->btd', h, model.w2) + model.b2[None, :, :]
    out = out * mask4[:, :, None]

    oc, oi, on, ou = out[:B], out[B:2 * B], out[2 * B:3 * B], out[3 * B:]
    return s * oc + s_int * oi + s_ind * on + (1.0 - (s + s_int + s_ind)) * ou


if __name__ == "__main__":
    B, T, D = 2, 8, 32
    H, C, F = 128, 1024, 32       # cond dim must exceed the 768 split

    key = jax.random.PRNGKey(0)
    kx, kc, km, kw = jax.random.split(key, 4)

    x = jax.random.normal(kx, (B, T, D), jnp.float32)
    timesteps = jnp.array([3, 7], dtype=jnp.int32)
    cond = jax.random.normal(kc, (B, C), jnp.float32)
    mask = (jax.random.uniform(km, (B, T)) > 0.2).astype(jnp.float32)

    inner_model = SyntheticModel(D, H, C, F, kw)
    cfg_model = ClassifierFreeSampleModelMultiple(
        inner_model, cfg_scale=2.5, cfg_scale_interaction=1.5, cfg_scale_individuals=0.5)

    out = jax.block_until_ready(cfg_model(x, timesteps, cond=cond, mask=mask))

    ref = _reference(inner_model, x, timesteps, cond, mask, 2.5, 1.5, 0.5)
    assert out.shape == (B, T, D)
    # bf16 MXU operands -> slightly loosened tolerance vs the pure-f32 reference.
    assert jnp.allclose(out, ref, rtol=3e-2, atol=3e-2), "mismatch vs reference"

    print("KERNEL_OK")
</pallas_src>

<mosaic_0001>
module attributes {stable_mosaic.version = 11 : i64} {
  func.func @_cfg_mlp_kernel(%arg0: i32, %arg1: i32, %arg2: memref<1x8x32xf32, #tpu.memory_space<vmem>>, %arg3: memref<1x8x1xf32, #tpu.memory_space<vmem>>, %arg4: memref<1x1x128xf32, #tpu.memory_space<vmem>>, %arg5: memref<1x1x128xf32, #tpu.memory_space<vmem>>, %arg6: memref<1x1x128xf32, #tpu.memory_space<vmem>>, %arg7: memref<32x128xbf16, #tpu.memory_space<vmem>>, %arg8: memref<512x128xbf16, #tpu.memory_space<vmem>>, %arg9: memref<1x128xf32, #tpu.memory_space<vmem>>, %arg10: memref<1x8x128xf32, #tpu.memory_space<vmem>>) attributes {dimension_semantics = [#tpu.dimension_semantics<parallel>, #tpu.dimension_semantics<parallel>], iteration_bounds = array<i64: 2, 1>, scalar_prefetch = 0 : i64, scratch_operands = 0 : i64, tpu.core_type = #tpu.core_type<tc>, window_params = [{transform_indices = @transform_0, window_bounds = array<i64: 1, 8, 32>}, {transform_indices = @transform_1, window_bounds = array<i64: 1, 8, 1>}, {transform_indices = @transform_2, window_bounds = array<i64: 1, 1, 128>}, {transform_indices = @transform_3, window_bounds = array<i64: 1, 1, 128>}, {transform_indices = @transform_4, window_bounds = array<i64: 1, 1, 128>}, {pipeline_mode = #tpu.pipeline_mode<synchronous>, transform_indices = @transform_5, window_bounds = array<i64: 32, 128>}, {pipeline_mode = #tpu.pipeline_mode<synchronous>, transform_indices = @transform_6, window_bounds = array<i64: 512, 128>}, {pipeline_mode = #tpu.pipeline_mode<synchronous>, transform_indices = @transform_7, window_bounds = array<i64: 1, 128>}, {transform_indices = @transform_8, window_bounds = array<i64: 1, 8, 128>}]} {
    %c0 = arith.constant 0 : index
    %c0_0 = arith.constant 0 : index
    %c0_1 = arith.constant 0 : index
    %0 = vector.load %arg2[%c0, %c0_0, %c0_1] : memref<1x8x32xf32, #tpu.memory_space<vmem>>, vector<1x8x32xf32>
    %1 = vector.shape_cast %0 : vector<1x8x32xf32> to vector<8x32xf32>
    %2 = arith.truncf %1 : vector<8x32xf32> to vector<8x32xbf16>
    %c0_2 = arith.constant 0 : index
    %c0_3 = arith.constant 0 : index
    %3 = vector.load %arg7[%c0_2, %c0_3] : memref<32x128xbf16, #tpu.memory_space<vmem>>, vector<32x128xbf16>
    %cst = arith.constant dense<0.000000e+00> : vector<8x128xf32>
    %4 = tpu.matmul %2, %3, %cst {dimension_numbers = #tpu.dot_dimension_numbers<[1], [0], [0], [1], [0, 0, 1, 1], [], []>} : vector<8x32xbf16>, vector<32x128xbf16>, vector<8x128xf32> -> vector<8x128xf32>
    %c0_4 = arith.constant 0 : index
    %c0_5 = arith.constant 0 : index
    %c0_6 = arith.constant 0 : index
    %5 = vector.load %arg4[%c0_4, %c0_5, %c0_6] : memref<1x1x128xf32, #tpu.memory_space<vmem>>, vector<1x1x128xf32>
    %6 = vector.shape_cast %5 : vector<1x1x128xf32> to vector<1x128xf32>
    %7 = vector.broadcast %6 : vector<1x128xf32> to vector<8x128xf32>
    %8 = arith.addf %4, %7 : vector<8x128xf32>
    %c0_7 = arith.constant 0 : index
    %c0_8 = arith.constant 0 : index
    %c0_9 = arith.constant 0 : index
    %9 = vector.load %arg5[%c0_7, %c0_8, %c0_9] : memref<1x1x128xf32, #tpu.memory_space<vmem>>, vector<1x1x128xf32>
    %10 = vector.shape_cast %9 : vector<1x1x128xf32> to vector<1x128xf32>
    %11 = vector.broadcast %10 : vector<1x128xf32> to vector<8x128xf32>
    %12 = arith.addf %8, %11 : vector<8x128xf32>
    %c0_10 = arith.constant 0 : index
    %c0_11 = arith.constant 0 : index
    %c0_12 = arith.constant 0 : index
    %13 = vector.load %arg6[%c0_10, %c0_11, %c0_12] : memref<1x1x128xf32, #tpu.memory_space<vmem>>, vector<1x1x128xf32>
    %14 = vector.shape_cast %13 : vector<1x1x128xf32> to vector<1x128xf32>
    %15 = vector.broadcast %14 : vector<1x128xf32> to vector<8x128xf32>
    %16 = arith.addf %8, %15 : vector<8x128xf32>
    %c0_13 = arith.constant 0 : index
    %c0_14 = arith.constant 0 : index
    %c0_15 = arith.constant 0 : index
    %17 = vector.load %arg6[%c0_13, %c0_14, %c0_15] : memref<1x1x128xf32, #tpu.memory_space<vmem>>, vector<1x1x128xf32>
    %18 = vector.shape_cast %17 : vector<1x1x128xf32> to vector<1x128xf32>
    %19 = vector.broadcast %18 : vector<1x128xf32> to vector<8x128xf32>
    %20 = arith.addf %12, %19 : vector<8x128xf32>
    %cst_16 = arith.constant 0.000000e+00 : f32
    %21 = vector.broadcast %cst_16 : f32 to vector<8x128xf32>
    %22 = arith.maximumf %20, %21 : vector<8x128xf32>
    %cst_17 = arith.constant 0.000000e+00 : f32
    %23 = vector.broadcast %cst_17 : f32 to vector<8x128xf32>
    %24 = arith.maximumf %12, %23 : vector<8x128xf32>
    %cst_18 = arith.constant 0.000000e+00 : f32
    %25 = vector.broadcast %cst_18 : f32 to vector<8x128xf32>
    %26 = arith.maximumf %16, %25 : vector<8x128xf32>
    %cst_19 = arith.constant 0.000000e+00 : f32
    %27 = vector.broadcast %cst_19 : f32 to vector<8x128xf32>
    %28 = arith.maximumf %8, %27 : vector<8x128xf32>
    %29 = tpu.concatenate %22, %24, %26, %28 in 1 : vector<8x128xf32>, vector<8x128xf32>, vector<8x128xf32>, vector<8x128xf32> -> vector<8x512xf32>
    %30 = arith.truncf %29 : vector<8x512xf32> to vector<8x512xbf16>
    %c0_20 = arith.constant 0 : index
    %c0_21 = arith.constant 0 : index
    %31 = vector.load %arg8[%c0_20, %c0_21] : memref<512x128xbf16, #tpu.memory_space<vmem>>, vector<512x128xbf16>
    %cst_22 = arith.constant dense<0.000000e+00> : vector<8x128xf32>
    %32 = tpu.matmul %30, %31, %cst_22 {dimension_numbers = #tpu.dot_dimension_numbers<[1], [0], [0], [1], [0, 0, 1, 1], [], []>} : vector<8x512xbf16>, vector<512x128xbf16>, vector<8x128xf32> -> vector<8x128xf32>
    %c0_23 = arith.constant 0 : index
    %c0_24 = arith.constant 0 : index
    %33 = vector.load %arg9[%c0_23, %c0_24] : memref<1x128xf32, #tpu.memory_space<vmem>>, vector<1x128xf32>
    %34 = vector.broadcast %33 : vector<1x128xf32> to vector<8x128xf32>
    %35 = arith.addf %32, %34 : vector<8x128xf32>
    %c0_25 = arith.constant 0 : index
    %c0_26 = arith.constant 0 : index
    %c0_27 = arith.constant 0 : index
    %36 = vector.load %arg3[%c0_25, %c0_26, %c0_27] : memref<1x8x1xf32, #tpu.memory_space<vmem>>, vector<1x8x1xf32>
    %37 = vector.shape_cast %36 : vector<1x8x1xf32> to vector<8x1xf32>
    %38 = vector.broadcast %37 : vector<8x1xf32> to vector<8x128xf32>
    %39 = arith.mulf %35, %38 : vector<8x128xf32>
    %c0_28 = arith.constant 0 : index
    %c0_29 = arith.constant 0 : index
    %c0_30 = arith.constant 0 : index
    %40 = vector.load %arg10[%c0_28, %c0_29, %c0_30] : memref<1x8x128xf32, #tpu.memory_space<vmem>>, vector<1x8x128xf32>
    %41 = vector.shape_cast %40 : vector<1x8x128xf32> to vector<8x128xf32>
    %42 = vector.shape_cast %39 : vector<8x128xf32> to vector<1x8x128xf32>
    tpu.vector_store %arg10[%c0_28, %c0_29, %c0_30], %42 {strides = array<i32>} : memref<1x8x128xf32, #tpu.memory_space<vmem>>, vector<1x8x128xf32>,
    return
  }
  func.func @transform_0(%arg0: i32, %arg1: i32) -> (i32, i32, i32) {
    %c0_i32 = arith.constant 0 : i32
    %c0_i32_0 = arith.constant 0 : i32
    return %arg0, %arg1, %c0_i32 : i32, i32, i32
  }
  func.func @transform_1(%arg0: i32, %arg1: i32) -> (i32, i32, i32) {
    %c0_i32 = arith.constant 0 : i32
    %c0_i32_0 = arith.constant 0 : i32
    return %arg0, %arg1, %c0_i32 : i32, i32, i32
  }
  func.func @transform_2(%arg0: i32, %arg1: i32) -> (i32, i32, i32) {
    %c0_i32 = arith.constant 0 : i32
    %c0_i32_0 = arith.constant 0 : i32
    %c0_i32_1 = arith.constant 0 : i32
    return %arg0, %c0_i32, %c0_i32_0 : i32, i32, i32
  }
  func.func @transform_3(%arg0: i32, %arg1: i32) -> (i32, i32, i32) {
    %c0_i32 = arith.constant 0 : i32
    %c0_i32_0 = arith.constant 0 : i32
    %c0_i32_1 = arith.constant 0 : i32
    return %arg0, %c0_i32, %c0_i32_0 : i32, i32, i32
  }
  func.func @transform_4(%arg0: i32, %arg1: i32) -> (i32, i32, i32) {
    %c0_i32 = arith.constant 0 : i32
    %c0_i32_0 = arith.constant 0 : i32
    %c0_i32_1 = arith.constant 0 : i32
    return %arg0, %c0_i32, %c0_i32_0 : i32, i32, i32
  }
  func.func @transform_5(%arg0: i32, %arg1: i32) -> (i32, i32) {
    %c0_i32 = arith.constant 0 : i32
    %c0_i32_0 = arith.constant 0 : i32
    %c0_i32_1 = arith.constant 0 : i32
    return %c0_i32, %c0_i32_0 : i32, i32
  }
  func.func @transform_6(%arg0: i32, %arg1: i32) -> (i32, i32) {
    %c0_i32 = arith.constant 0 : i32
    %c0_i32_0 = arith.constant 0 : i32
    %c0_i32_1 = arith.constant 0 : i32
    return %c0_i32, %c0_i32_0 : i32, i32
  }
  func.func @transform_7(%arg0: i32, %arg1: i32) -> (i32, i32) {
    %c0_i32 = arith.constant 0 : i32
    %c0_i32_0 = arith.constant 0 : i32
    %c0_i32_1 = arith.constant 0 : i32
    return %c0_i32, %c0_i32_0 : i32, i32
  }
  func.func @transform_8(%arg0: i32, %arg1: i32) -> (i32, i32, i32) {
    %c0_i32 = arith.constant 0 : i32
    %c0_i32_0 = arith.constant 0 : i32
    return %arg0, %arg1, %c0_i32 : i32, i32, i32
  }
}

</mosaic_0001>

<bundles_post_ra>
// kernel: tpu_custom_call.1
= control target key start
LH: loop header
LB: loop body
LE: loop exit
PB: predicated region body
PF: predicated region fallthrough
CT: control target
= control target key end

     0   :  { %s1683_s0 = inlined_call_operand.vmem [shape: f32[2,8,32], index: 0, kind: input, shape index: {}]   ;;  %s1684_s1 = inlined_call_operand.vmem [shape: f32[2,8,1], index: 1, kind: input, shape index: {}]   ;;  %s1685_s2 = inlined_call_operand.vmem [shape: f32[2,1,128], index: 2, kind: input, shape index: {}]   ;;  %s1686_s3 = inlined_call_operand.vmem [shape: f32[2,1,128], index: 3, kind: input, shape index: {}]   ;;  %s1687_s4 = inlined_call_operand.hbm [shape: f32[2,1,128], index: 4, kind: input, shape index: {}]   ;;  %s1688_s5 = inlined_call_operand.hbm [shape: bf16[32,128], index: 5, kind: input, shape index: {}]   ;;  %s1689_s6 = inlined_call_operand.hbm [shape: bf16[512,128], index: 6, kind: input, shape index: {}]   ;;  %s1690_s7 = inlined_call_operand.vmem [shape: f32[1,128], index: 7, kind: input, shape index: {}]   ;;  %s1691_s8 = inlined_call_operand.hbm [shape: f32[2,8,128], index: 8, kind: output, shape index: {}]  }
   0x1   :  { %1692 = sst [smem:[#allocation12_spill]] %s1688_s5 }
   0x2   :  { %13 = vsyncpa [#allocation3], 0 }
   0x3   :  { %15 = vsyncpa [#allocation3 + $0x1], 0 }
   0x4   :  { %16 = vsyncpa [#allocation6], 0 }
   0x5   :  { %17 = vsyncpa [#allocation4], 0 }
   0x6   :  { %19 = vsyncpa [#allocation4 + $0x1], 0  ;;  %s1494_s27 = smov 0   ;;  %s1496_s28 = smov 0  }
   0x7   :  { %s1498_s29 = smov 0   ;;  %s1500_s30 = smov 0  }
   0x8   :  { %s1502_s9 = smov 0   ;;  %s1504_s10 = smov 0  }
   0x9 LB: > { %s988_s11 = sadd.s32 4294967295, %s1442_s10   ;;  %p990_p0 = scmp.ge.s32.totalorder %s1442_s10, 1  ;;  %s1442_s10 = sphi %s1504_s10, %s25_s10   ;;  %s1438_s9 = sphi %s1502_s9, %s1704_s9   ;;  %s1434_s30 = sphi %s1500_s30, %s1703_s30   ;;  %s1430_s29 = sphi %s1498_s29, %s1702_s29   ;;  %s1426_s28 = sphi %s1496_s28, %s1701_s28   ;;  %s1422_s27 = sphi %s1494_s27, %s1700_s27  }
   0xa   : > { %p1528_p1 = scmp.eq.s32.totalorder %s988_s11, 0  ;;  %p267_p2 = scmp.lt.s32.totalorder %s1442_s10, 3 }
   0xb   : > { %s1694_s5 = sld [smem:[#allocation12_spill]]  ;;  %s1444_s17 = smov [#allocation5]  }
   0xc   : > { %p1536_p3 = pnand %p990_p0, %p267_p2  ;;  %s280_s18 = sshll.u32 %s1444_s17, 4  ;;  %s281_s18 = int_to_ptr.vmem [resolvable:$true] %s280_s18 }
   0xd   : > { %p993_p6 = scmp.ge.s32.totalorder %s1442_s10, 2  ;;  %s292_s21 = sshll.u32 %s1689_s6, 4  ;;  %s293_s21 = int_to_ptr.hbm [resolvable:$true] %s292_s21 }
   0xe   : > { %p1187_p4 = pneg %p1536_p3  ;;  %s1445_s22 = smov 64  }
   0xf   : > { %s1446_s23 = smov 4   ;;  %s1447_s24 = smov [#allocation7]  }
  0x10   : > { %p1188_p5 = pnand %p1187_p4, %p1528_p1  ;;  %s294_s25 = sshll.u32 %s1447_s24, 4  ;;  %s295_s25 = int_to_ptr.vmem [resolvable:$true] %s294_s25 }
  0x11   : > { %s278_s15 = sshll.u32 %s1694_s5, 4  ;;  %s989_s26 = sadd.s32 4294967294, %s1442_s10   ;;  %s279_s15 = int_to_ptr.hbm [resolvable:$true] %s278_s15 }
  0x12   : > { %1190 = dma.hbm_to_vmem [thread:$0]  (!%p1188_p5), %s279_s15, 256, %s281_s18, [#allocation6], %s1445_s22, %s1445_s22, %s1446_s23  }
  0x13   : > { %1193 = dma.hbm_to_vmem [thread:$0]  (!%p1188_p5), %s293_s21, 4096, %s295_s25, [#allocation6], %s1445_s22, %s1445_s22, %s1446_s23  }
  0x14   : > { %s37_s13 = sadd.s32 1, %s1438_s9  ;;  %s152_s14 = sadd.s32 1, %s1430_s29 }
  0x15   : > { %p39_p7 = scmp.ge.s32.totalorder %s37_s13, 2  ;;  %p159_p8 = scmp.ne.s32.totalorder %s1430_s29, %s1426_s28 }
  0x16   : > { %p160_p9 = scmp.eq.s32.totalorder %s1442_s10, 0  ;;  %p165_p11 = scmp.ne.s32.totalorder %s1426_s28, %s1422_s27 }
  0x17   : > { %s1706_s13 = smov (%p39_p7, %s37_s13), 0  ;;  %p254_p12 = scmp.eq.s32.totalorder %s988_s11, 1 }
  0x18   : > { %p1556_p10 = por %p160_p9, %p159_p8  ;;  %s149_s17 = ssub.s32 %s1438_s9, %s1706_s13 }
  0x19   : > { %p150_p13 = scmp.eq.s32.totalorder %s149_s17, 0  ;;  %p1568_p0 = por %p1528_p1, %p165_p11 }
  0x1a   : > { %p1572_p2 = por %p254_p12, %p159_p8  ;;  %p260_p4 = scmp.eq.s32.totalorder %s989_s26, 1 }
  0x1b   : > { %s1577_s20 = scalar_select %p150_p13, %s1430_s29, %s152_s14  }
  0x1c   : > { %p1579_p5 = por %p260_p4, %p165_p11  ;;  %p1204_p7 = scmp.lt.s32.totalorder %s1442_s10, 2 }
  0x1d   : > { %s343_s22 = sand.u32 1, %s1430_s29   ;;  %s349_s24 = scalar_lea.hbm %s1687_s4, %s1438_s9 }
  0x1e   : > { %s351_s25 = sshll.u32 %s349_s24, 4  ;;  %s346_s17 = scalar_lea.vmem [#allocation2], %s343_s22  ;;  %s352_s25 = int_to_ptr.hbm [resolvable:$true] %s351_s25 }
  0x1f   : > { %s353_s5 = sshll.u32 %s346_s17, 4  ;;  %p1195_p8 = pnand %p1204_p7, %p1556_p10  ;;  %s354_s5 = int_to_ptr.vmem [resolvable:$true] %s353_s5 }
  0x20   : > { %s344_s26 = scalar_lea.sflag [#allocation3], %s343_s22  ;;  %362 = sbr.rel (%p1536_p3) target bundleno = 327 (0x147), region = 52 }
  0x21   : > { %1197 = dma.hbm_to_vmem [thread:$0]  (!%p1195_p8), %s352_s25, 16, %s354_s5, %s344_s26  }
  0x22   : > { %s1594_s14 = sand.u32 (!%p1536_p3), 1, %s1426_s28  }
  0x23   : > { %s365_s11 = scalar_lea.sflag (!%p1536_p3), [#allocation3], %s1594_s14  ;;  %s367_s23 = scalar_lea.vmem (!%p1536_p3), [#allocation2], %s1594_s14 }
  0x25   : > { %1409 = dma.done.wait (%p1568_p0), %s365_s11, 16  }
  0x26   : > { %1411 = vsyncadd (%p1568_p0), %s365_s11, 4294967280 }
  0x27   : > { %1413 = dma.done.wait (%p1528_p1), [#allocation6], 4352  }
  0x28   : > { %1415 = vsyncadd (%p1528_p1), [#allocation6], 4294962944  ;;  %p430_p3 = scmp.lt.s32.totalorder %s1434_s30, 1  ;;  %v1142_v0 = vld [vmem:[#allocation5 + $0x8] sm:$0xff]  ;;  %v1141_v3 = vld [vmem:[#allocation5] sm:$0xff]  ;;  %vm473_vm0 = vcmask 261120  }
  0x29   : > { %v1158_v1 = vld [vmem:[#allocation7 + $0x78] sm:$0xff]  ;;  %483 = vmatpush.bf16.msra.mxu0 %v1142_v0  ;;  %v1157_v7 = vld [vmem:[#allocation7 + $0x70] sm:$0xff]  ;;  %v1156_v12 = vld [vmem:[#allocation7 + $0x68] sm:$0xff]  ;;  %v1448_v37 = vmov 0  }
  0x2a   : > { %s1608_s5 = scalar_select %p430_p3, %s1434_s30, 1  ;;  %v1166_v2 = vld [vmem:[#allocation7 + $0xb8] sm:$0xff]  ;;  %782 = vmatpush.bf16.msra.mxu2 %v1158_v1  ;;  %v1165_v8 = vld [vmem:[#allocation7 + $0xb0] sm:$0xff]  ;;  %v1164_v13 = vld [vmem:[#allocation7 + $0xa8] sm:$0xff]  ;;  %1261 = vset.pattern.permute.xlu0 %v1448_v37 }
  0x2b   : > { %v1150_v5 = vld [vmem:[#allocation7 + $0x38] sm:$0xff]  ;;  %795 = vmatpush.bf16.msra.mxu3 %v1166_v2  ;;  %v1149_v9 = vld [vmem:[#allocation7 + $0x30] sm:$0xff]  ;;  %v1148_v14 = vld [vmem:[#allocation7 + $0x28] sm:$0xff] }
  0x2c   : > { %s998_s16 = sshll.u32 %s1608_s5, 3  ;;  %v1174_v6 = vld [vmem:[#allocation7 + $0xf8] sm:$0xff]  ;;  %769 = vmatpush.bf16.msra.mxu1 %v1150_v5  ;;  %v1173_v11 = vld [vmem:[#allocation7 + $0xf0] sm:$0xff]  ;;  %s446_s25 = scalar_lea.vmem %s1685_s2, %s1608_s5  ;;  %v1172_v15 = vld [vmem:[#allocation7 + $0xe8] sm:$0xff] }
  0x2d   : > { %s436_s18 = scalar_lea.vmem %s1683_s0, %s998_s16  ;;  %484 = vmatpush.bf16.msra.mxu0 %v1141_v3  ;;  %s449_s11 = scalar_lea.vmem %s1686_s3, %s1608_s5  ;;  %v1155_v16 = vld [vmem:[#allocation7 + $0x60] sm:$0xff]  ;;  %v1154_v20 = vld [vmem:[#allocation7 + $0x58] sm:$0xff]  ;;  %v1153_v24 = vld [vmem:[#allocation7 + $0x50] sm:$0xff] }
  0x2e   : > { %v451_v4 = vld [vmem:[%s436_s18] sm:$0xff]  ;;  %783 = vmatpush.bf16.msra.mxu2 %v1157_v7  ;;  %v1163_v17 = vld [vmem:[#allocation7 + $0xa0] sm:$0xff]  ;;  %v1162_v21 = vld [vmem:[#allocation7 + $0x98] sm:$0xff]  ;;  %s443_s18 = scalar_lea.vmem %s1684_s1, %s998_s16  ;;  %s997_s16 = sshll.u32 %s1594_s14, 3 }
  0x2f   : > { %v452_v10 = vpack.c.bf16 %v451_v4, %v451_v4  ;;  %796 = vmatpush.bf16.msra.mxu3 %v1165_v8  ;;  %v1147_v18 = vld [vmem:[#allocation7 + $0x20] sm:$0xff]  ;;  %v1146_v22 = vld [vmem:[#allocation7 + $0x18] sm:$0xff]  ;;  %v1161_v25 = vld [vmem:[#allocation7 + $0x90] sm:$0xff] }
  0x30   : > { %770 = vmatpush.bf16.msra.mxu1 %v1149_v9  ;;  %v1171_v19 = vld [vmem:[#allocation7 + $0xe0] sm:$0xff]  ;;  %v1170_v23 = vld [vmem:[#allocation7 + $0xd8] sm:$0xff]  ;;  %v1169_v26 = vld [vmem:[#allocation7 + $0xd0] sm:$0xff] }
  0x31   : > { %808 = vmatpush.bf16.msrb.mxu0 %v1174_v6  ;;  %v1145_v27 = vld [vmem:[#allocation7 + $0x10] sm:$0xff]  ;;  %v1168_v28 = vld [vmem:[#allocation7 + $0xc8] sm:$0xff]  ;;  %v1167_v32 = vld [vmem:[#allocation7 + $0xc0] sm:$0xff] }
  0x32   : > { %1008 = vmatmul.msk.bf16.vlgmr.msra.gmra.mxu0 %vm473_vm0, %v452_v10  ;;  %784 = vmatpush.bf16.msra.mxu2 %v1156_v12  ;;  %v1152_v29 = vld [vmem:[#allocation7 + $0x48] sm:$0xff]  ;;  %v1151_v33 = vld [vmem:[#allocation7 + $0x40] sm:$0xff] }
  0x33   : > { %797 = vmatpush.bf16.msra.mxu3 %v1164_v13  ;;  %v1160_v30 = vld [vmem:[#allocation7 + $0x88] sm:$0xff]  ;;  %v1159_v34 = vld [vmem:[#allocation7 + $0x80] sm:$0xff] }
  0x34   : > { %771 = vmatpush.bf16.msra.mxu1 %v1148_v14  ;;  %v1144_v31 = vld [vmem:[#allocation7 + $0x8] sm:$0xff]  ;;  %v1143_v35 = vld [vmem:[#allocation7] sm:$0xff] }
  0x35   : > { %809 = vmatpush.bf16.msrb.mxu0 %v1173_v11  ;;  %v821_v36 = vld [vmem:[%s443_s18] sm:$0xff]  ;;  %s429_s18 = scalar_lea.vmem [#allocation8], %s997_s16  ;;  %s1376_s16 = scalar_lea.hbm %s1691_s8, 16 }
  0x36   : > { %785 = vmatpush.bf16.msra.mxu2 %v1155_v16  ;;  %824 = vperm.xlu0 %1261, %v821_v36   ;;  %v1262_v38 = vld [vmem:[%s446_s25] ss:$0 sm:$0xff]  ;;  %s1138_s25 = sshll.u32 %s1434_s30, 3  ;;  %s843_s12 = sshll.u32 %s429_s18, 4  ;;  %s844_s12 = int_to_ptr.vmem [resolvable:$true] %s843_s12 }
  0x37   : > { %798 = vmatpush.bf16.msra.mxu3 %v1163_v17  ;;  %v1263_v39 = vld [vmem:[%s449_s11] ss:$0 sm:$0xff]  ;;  %s841_s22 = scalar_lea.hbm %s1691_s8, %s1138_s25  ;;  %s830_s30 = scalar_lea.sflag [#allocation4], %s1594_s14 }
  0x38   : > { %772 = vmatpush.bf16.msra.mxu1 %v1147_v18  ;;  %v1264_v40 = vld [vmem:[%s367_s23] ss:$0 sm:$0xff]  ;;  %s845_s24 = sshll.u32 %s841_s22, 4  ;;  %s846_s24 = int_to_ptr.hbm [resolvable:$true] %s845_s24 }
  0x39   : > { %810 = vmatpush.bf16.msrb.mxu0 %v1172_v15  ;;  %v1265_v56 = vld [vmem:[%s1690_s7] ss:$0 sm:$0xff]  ;;  %s1370_s17 = sshra.s32 %s846_s24, 4  ;;  %s1371_s17 = int_to_ptr.hbm [resolvable:$true] %s1370_s17 }
  0x3a   : > { %786 = vmatpush.bf16.msra.mxu2 %v1154_v20  ;;  %s1372_s26 = scalar_lea.hbm %s1371_s17, 8  ;;  %p1377_p11 = scmp.lt.s32.totalorder %s1371_s17, %s1691_s8 }
  0x3b   : > { %799 = vmatpush.bf16.msra.mxu3 %v1162_v21  ;;  %p1373_p1 = scmp.ne.s32.totalorder %s1371_s17, %s1372_s26  ;;  %p1378_p12 = scmp.lt.s32.totalorder %s1376_s16, %s1372_s26 }
  0x3c   : > { %773 = vmatpush.bf16.msra.mxu1 %v1146_v22 }
  0x3d   : > { %811 = vmatpush.bf16.msrb.mxu0 %v1171_v19  ;;  %p1374_p9 = pnand %p1373_p1, %p1572_p2  ;;  %p1379_p13 = por %p1378_p12, %p1377_p11 }
  0x3e   : > { %787 = vmatpush.bf16.msra.mxu2 %v1153_v24 }
  0x3f   : > { %800 = vmatpush.bf16.msra.mxu3 %v1161_v25  ;;  %p1375_p10 = pneg %p1374_p9 }
  0x40   : > { %774 = vmatpush.bf16.msra.mxu1 %v1145_v27 }
  0x41   : > { %812 = vmatpush.bf16.msrb.mxu0 %v1170_v23  ;;  %p1380_p0 = pnand %p1379_p13, %p1375_p10 }
  0x42   : > { %788 = vmatpush.bf16.msra.mxu2 %v1152_v29 }
  0x43   : > { %801 = vmatpush.bf16.msra.mxu3 %v1160_v30 }
  0x44   : > { %775 = vmatpush.bf16.msra.mxu1 %v1144_v31 }
  0x45   : > { %813 = vmatpush.bf16.msrb.mxu0 %v1169_v26 }
  0x46   : > { %789 = vmatpush.bf16.msra.mxu2 %v1151_v33 }
  0x47   : > { %802 = vmatpush.bf16.msra.mxu3 %v1159_v34 }
  0x48   : > { %776 = vmatpush.bf16.msra.mxu1 %v1143_v35 }
  0x49   : > { %814 = vmatpush.bf16.msrb.mxu0 %v1168_v28 }
  0x4d   : > { %815 = vmatpush.bf16.msrb.mxu0 %v1167_v32 }
  0xa8   : > { %v825_v1 = vpop.permute.xlu0 %824 }
  0xaf   : > { %v486_v41 = vpop.f32.mrf.mxu0 }
  0xb0   : > { %v487_v42 = vadd.f32 %v1262_v38, %v486_v41 }
  0xb2   : > { %v504_v43 = vmax.f32 %v487_v42, 0.0  ;;  %v494_v44 = vadd.f32 %v1263_v39, %v487_v42  ;;  %v499_v45 = vadd.f32 %v1264_v40, %v487_v42 }
  0xb4   : > { %v508_v46 = vpack.c.bf16 %v504_v43, %v504_v43  ;;  %v502_v47 = vmax.f32 %v494_v44, 0.0  ;;  %v503_v48 = vmax.f32 %v499_v45, 0.0  ;;  %v500_v49 = vadd.f32 %v1264_v40, %v494_v44 }
  0xb6   : > { %816 = vmatmul.bf16.vlgmr.msrb.gmra.mxu0 %v508_v46  ;;  %v506_v50 = vpack.c.bf16 %v502_v47, %v502_v47  ;;  %v507_v51 = vpack.c.bf16 %v503_v48, %v503_v48  ;;  %v501_v52 = vmax.f32 %v500_v49, 0.0 }
  0xb7   : > { %v488_v53 = vpop.f32.mrf.mxu0 }
  0xb8   : > { %790 = vmatmul.bf16.vlgmr.msra.gmra.mxu2 %v506_v50  ;;  %803 = vmatmul.bf16.vlgmr.msra.gmra.mxu3 %v507_v51  ;;  %v505_v54 = vpack.c.bf16 %v501_v52, %v501_v52 }
  0xba   : > { %777 = vmatmul.bf16.vlgmr.msra.gmra.mxu1 %v505_v54 }
 0x133   : > { %v817_v55 = vpop.f32.mrf.mxu0 }
 0x137   : > { %v778_v57 = vpop.f32.mrf.mxu1 }
 0x138   : > { %v779_v58 = vadd.f32 %v1265_v56, %v778_v57 }
 0x13b   : > { %v791_v59 = vpop.f32.mrf.mxu2  ;;  %v804_v60 = vpop.f32.mrf.mxu3 }
 0x13c   : > { %v792_v61 = vadd.f32 %v791_v59, %v779_v58  ;;  %v819_v62 = vpop.f32.mrf.mxu0 }
 0x13e   : > { %v805_v63 = vadd.f32 %v804_v60, %v792_v61 }
 0x13f   : > { %v780_v0 = vpop.f32.mrf.mxu1 }
 0x140   : > { %v818_v2 = vadd.f32 %v817_v55, %v805_v63 }
 0x142   : > { %v827_v3 = vmul.f32 %v825_v1, %v818_v2 }
 0x143   : > { %v793_v4 = vpop.f32.mrf.mxu2  ;;  %v806_v5 = vpop.f32.mrf.mxu3 }
 0x144   : > { %828 = vst [vmem:[%s429_s18] sm:$0xff] %v827_v3 }
 0x145   : > { %1383 = shalt.err (!%p1380_p0)
}
 0x146   : > { %1185 = dma.vmem_to_hbm [thread:$0]  (%p1572_p2), %s844_s12, 128, %s846_s24, %s830_s30  }
 0x147 PF: > { %s857_s14 = sand.u32 1, %s1422_s27   ;;  %p1199_p4 = pnand %p993_p6, %p1579_p5 }
 0x148   : > { %s858_s15 = scalar_lea.sflag [#allocation4], %s857_s14 }
 0x149   : > { %p1200_p7 = pneg %p1199_p4 }
 0x14b   : > { %1417 = dma.done.wait (%p1200_p7), %s858_s15, 128  }
 0x14c   : > { %1419 = vsyncadd (%p1200_p7), %s858_s15, 4294967168  ;;  %s25_s10 = sadd.s32 1, %s1442_s10   ;;  %s1700_s27 = smov %s1426_s28 }
 0x14d   : > { %p22_p8 = scmp.ge.s32.totalorder %s25_s10, 4   ;;  %s1701_s28 = smov %s1430_s29 }
 0x14e   : > { %s1702_s29 = smov %s1577_s20  ;;  %s1703_s30 = smov %s1438_s9 }
 0x14f   : > { %s1704_s9 = smov %s1706_s13  ;;  %24 = sbr.rel (!%p22_p8) target bundleno = 9 (0x9), region = 117 }
 0x154   :  { %864 = vsyncpa [#allocation3], 1 }
 0x155   :  { %866 = vsyncpa [#allocation3 + $0x1], 1 }
 0x156   :  { %867 = vsyncpa [#allocation6], 1 }
 0x157   :  { %868 = vsyncpa [#allocation4], 1 }
 0x158   :  { %870 = vsyncpa [#allocation4 + $0x1], 1 }

</bundles_post_ra>
